<compile_context>
chip_gen: v6e
topology: v6e:2x2x1
jax: 0.10.0
libtpu: 0.0.40
codegen_flags: <defaults>
</compile_context>

<pallas_src>
import functools

import jax
import jax.numpy as jnp
from jax.experimental import pallas as pl
from jax.experimental.pallas import tpu as pltpu

_VMEM_LIMIT = 32 * 1024 * 1024


def _round_up(x, m):
    return ((x + m - 1) // m) * m


# ---------------------------------------------------------------------------
# Pallas kernels
# ---------------------------------------------------------------------------
def matmul_bias_silu_kernel(x_ref, w_ref, b_ref, o_ref):
    # x: [TM, K] bf16, w: [K, N] bf16, b: [1, N] f32  ->  o: [TM, N] (o_ref dtype)
    y = jnp.dot(x_ref[...], w_ref[...], preferred_element_type=jnp.float32)
    y = y + b_ref[...]
    y = y * jax.nn.sigmoid(y)  # SiLU (exp/recip routed to EUP)
    o_ref[...] = y.astype(o_ref.dtype)


def head_pool_kernel(f_ref, w_ref, b_ref, o_ref, acc_ref, *, p_total, tp):
    # f: [1, TP, Cin] bf16 tile, w: [Cin, 1280] bf16, b: [1, 1280] f32
    # acc: [1, 1280] f32 scratch (persists across the P grid axis)
    # o:  [1, 1, 1280] f32, written only at the last P tile.
    pi = pl.program_id(1)

    @pl.when(pi == 0)
    def _():
        acc_ref[...] = jnp.zeros_like(acc_ref)

    f = f_ref[0]  # [TP, Cin]
    y = jnp.dot(f, w_ref[...], preferred_element_type=jnp.float32)
    y = y + b_ref[...]
    y = y * jax.nn.sigmoid(y)  # SiLU

    # Mask rows that come from zero-padding of the spatial axis
    # (SiLU(bias) of padded rows must not pollute the mean).
    row = jax.lax.broadcasted_iota(jnp.int32, (tp, 1), 0)
    valid = (pi * tp + row) < p_total
    y = jnp.where(valid, y, 0.0)

    acc_ref[...] += jnp.sum(y, axis=0, keepdims=True)

    @pl.when(pi == pl.num_programs(1) - 1)
    def _():
        o_ref[...] = (acc_ref[...] * (1.0 / p_total))[None]


# ---------------------------------------------------------------------------
# Wrappers (glue: im2col, padding, reshapes, weight layout conversion)
# ---------------------------------------------------------------------------
def _pallas_matmul_bias_silu(x2d, w, b2d, out_dtype=jnp.bfloat16, tm_target=1024):
    """x2d: [M, K] bf16, w: [K, N] bf16, b2d: [1, N] f32 -> [M, N] out_dtype."""
    M, K = x2d.shape
    N = w.shape[1]
    tm = _round_up(min(M, tm_target), 8)
    m_pad = _round_up(M, tm)
    if m_pad != M:
        x2d = jnp.pad(x2d, ((0, m_pad - M), (0, 0)))

    out = pl.pallas_call(
        matmul_bias_silu_kernel,
        out_shape=jax.ShapeDtypeStruct((m_pad, N), out_dtype),
        grid=(m_pad // tm,),
        in_specs=[
            pl.BlockSpec((tm, K), lambda i: (i, 0)),
            pl.BlockSpec((K, N), lambda i: (0, 0)),
            pl.BlockSpec((1, N), lambda i: (0, 0)),
        ],
        out_specs=pl.BlockSpec((tm, N), lambda i: (i, 0)),
        compiler_params=pltpu.CompilerParams(
            dimension_semantics=("parallel",),
            vmem_limit_bytes=_VMEM_LIMIT,
        ),
    )(x2d, w, b2d)
    return out[:M]


def _pallas_head_pool(feat, w, b2d, tp_target=512):
    """feat: [B, P, Cin] bf16, w: [Cin, Cout] bf16, b2d: [1, Cout] f32 -> [B, Cout] f32."""
    B, P, Cin = feat.shape
    Cout = w.shape[1]
    tp = _round_up(min(P, tp_target), 8)
    p_pad = _round_up(P, tp)
    if p_pad != P:
        feat = jnp.pad(feat, ((0, 0), (0, p_pad - P), (0, 0)))
    n_p = p_pad // tp

    kernel = functools.partial(head_pool_kernel, p_total=P, tp=tp)
    out = pl.pallas_call(
        kernel,
        out_shape=jax.ShapeDtypeStruct((B, 1, Cout), jnp.float32),
        grid=(B, n_p),
        in_specs=[
            pl.BlockSpec((1, tp, Cin), lambda b, p: (b, p, 0)),
            pl.BlockSpec((Cin, Cout), lambda b, p: (0, 0)),
            pl.BlockSpec((1, Cout), lambda b, p: (0, 0)),
        ],
        out_specs=pl.BlockSpec((1, 1, Cout), lambda b, p: (b, 0, 0)),
        scratch_shapes=[pltpu.VMEM((1, Cout), jnp.float32)],
        compiler_params=pltpu.CompilerParams(
            dimension_semantics=("parallel", "arbitrary"),
            vmem_limit_bytes=_VMEM_LIMIT,
        ),
    )(feat, w, b2d)
    return out.reshape(B, Cout)


def _im2col_nhwc(x, k, stride, pad, k_pad_to=None):
    """x: [B, H, W, C] -> ([B*OH*OW, K], (B, OH, OW)); patch order (kh, kw, cin)."""
    B, H, W, C = x.shape
    OH = (H + 2 * pad - k) // stride + 1
    OW = (W + 2 * pad - k) // stride + 1
    xp = jnp.pad(x, ((0, 0), (pad, pad), (pad, pad), (0, 0)))
    cols = []
    for di in range(k):
        for dj in range(k):
            cols.append(xp[:, di:di + OH * stride:stride, dj:dj + OW * stride:stride, :])
    patches = jnp.concatenate(cols, axis=-1)  # [B, OH, OW, k*k*C]
    cols2d = patches.reshape(B * OH * OW, k * k * C)
    if k_pad_to is not None and k_pad_to > cols2d.shape[1]:
        cols2d = jnp.pad(cols2d, ((0, 0), (0, k_pad_to - cols2d.shape[1])))
    return cols2d, (B, OH, OW)


def _torch_conv_w_to_im2col(w_oihw, k_pad_to=None):
    """[Cout, Cin, kH, kW] (PyTorch) -> [kH*kW*Cin (padded), Cout] bf16, im2col order."""
    cout = w_oihw.shape[0]
    w = jnp.transpose(w_oihw, (2, 3, 1, 0)).reshape(-1, cout)
    if k_pad_to is not None and k_pad_to > w.shape[0]:
        w = jnp.pad(w, ((0, k_pad_to - w.shape[0]), (0, 0)))
    return w.astype(jnp.bfloat16)


def init_params(key):
    k1, k2, k3, k4, k5, k6 = jax.random.split(key, 6)
    return {
        # PyTorch conv weight layout [Cout, Cin, kH, kW]
        "w_stem": jax.random.normal(k1, (32, 3, 3, 3), jnp.float32) * 0.1,
        "b_stem": jax.random.normal(k2, (32,), jnp.float32) * 0.01,
        "w_conv2": jax.random.normal(k3, (64, 32, 3, 3), jnp.float32) * 0.05,
        "b_conv2": jax.random.normal(k4, (64,), jnp.float32) * 0.01,
        "w_head": jax.random.normal(k5, (1280, 64, 1, 1), jnp.float32) * 0.05,
        "b_head": jax.random.normal(k6, (1280,), jnp.float32) * 0.01,
    }


def audio_backbone_forward(params, x_nchw):
    """x_nchw: [B, 3, H, W] float32 -> [B, 1280] float32."""
    x = jnp.transpose(x_nchw, (0, 2, 3, 1)).astype(jnp.bfloat16)  # NCHW -> NHWC, bf16

    # --- stem conv 3x3 / stride 2 / pad 1, 3 -> 32, SiLU (K padded 27 -> 32) ---
    cols, (B, OH, OW) = _im2col_nhwc(x, k=3, stride=2, pad=1, k_pad_to=32)
    w = _torch_conv_w_to_im2col(params["w_stem"], k_pad_to=32)
    y = _pallas_matmul_bias_silu(cols, w, params["b_stem"].reshape(1, -1))
    x = y.reshape(B, OH, OW, 32)

    # --- conv 3x3 / stride 2 / pad 1, 32 -> 64, SiLU (K = 288) ---
    cols, (B, OH, OW) = _im2col_nhwc(x, k=3, stride=2, pad=1)
    w = _torch_conv_w_to_im2col(params["w_conv2"])
    y = _pallas_matmul_bias_silu(cols, w, params["b_conv2"].reshape(1, -1))
    x = y.reshape(B, OH, OW, 64)

    # --- 1x1 head conv 64 -> 1280, SiLU, global avg pool, flatten ---
    feat = x.reshape(B, OH * OW, 64)
    w_head = params["w_head"].reshape(1280, 64).T.astype(jnp.bfloat16)  # [64, 1280]
    out = _pallas_head_pool(feat, w_head, params["b_head"].reshape(1, -1))
    return out  # [B, 1280] f32


def _reference_forward(params, x_nchw):
    """Pure-JAX f32 reference of the same representative backbone."""
    x = jnp.transpose(x_nchw, (0, 2, 3, 1))

    def conv(x, w_oihw, b, stride):
        w = jnp.transpose(w_oihw, (2, 3, 1, 0))  # HWIO
        y = jax.lax.conv_general_dilated(
            x, w, (stride, stride), ((1, 1), (1, 1)),
            dimension_numbers=("NHWC", "HWIO", "NHWC"))
        y = y + b
        return y * jax.nn.sigmoid(y)

    x = conv(x, params["w_stem"], params["b_stem"], 2)
    x = conv(x, params["w_conv2"], params["b_conv2"], 2)
    y = jnp.einsum("bhwc,oc->bhwo", x, params["w_head"].reshape(1280, 64))
    y = y + params["b_head"]
    y = y * jax.nn.sigmoid(y)
    return jnp.mean(y, axis=(1, 2))


if __name__ == "__main__":
    key = jax.random.PRNGKey(0)
    k_param, k_x = jax.random.split(key)
    params = init_params(k_param)

    # Small spectrogram-like input, NCHW as PyTorch would feed it.
    x = jax.random.normal(k_x, (2, 3, 16, 16), jnp.float32)

    out = audio_backbone_forward(params, x)
    out = jax.block_until_ready(out)

    assert out.shape == (2, 1280), out.shape
    assert out.dtype == jnp.float32, out.dtype
    assert bool(jnp.all(jnp.isfinite(out)))

    ref = _reference_forward(params, x)
    # bf16 matmul path vs f32 reference -> loose tolerance.
    assert bool(jnp.allclose(out, ref, rtol=2e-1, atol=2e-2))

    print("KERNEL_OK")
</pallas_src>

<mosaic_0001>
module attributes {stable_mosaic.version = 11 : i64} {
  func.func @matmul_bias_silu_kernel(%arg0: i32, %arg1: memref<128x32xbf16, #tpu.memory_space<vmem>>, %arg2: memref<32x32xbf16, #tpu.memory_space<vmem>>, %arg3: memref<1x32xf32, #tpu.memory_space<vmem>>, %arg4: memref<128x32xbf16, #tpu.memory_space<vmem>>) attributes {dimension_semantics = [#tpu.dimension_semantics<parallel>], iteration_bounds = array<i64: 1>, scalar_prefetch = 0 : i64, scratch_operands = 0 : i64, tpu.core_type = #tpu.core_type<tc>, window_params = [{transform_indices = @transform_0, window_bounds = array<i64: 128, 32>}, {pipeline_mode = #tpu.pipeline_mode<synchronous>, transform_indices = @transform_1, window_bounds = array<i64: 32, 32>}, {pipeline_mode = #tpu.pipeline_mode<synchronous>, transform_indices = @transform_2, window_bounds = array<i64: 1, 32>}, {transform_indices = @transform_3, window_bounds = array<i64: 128, 32>}]} {
    %c0 = arith.constant 0 : index
    %c0_0 = arith.constant 0 : index
    %0 = vector.load %arg1[%c0, %c0_0] : memref<128x32xbf16, #tpu.memory_space<vmem>>, vector<128x32xbf16>
    %c0_1 = arith.constant 0 : index
    %c0_2 = arith.constant 0 : index
    %1 = vector.load %arg2[%c0_1, %c0_2] : memref<32x32xbf16, #tpu.memory_space<vmem>>, vector<32x32xbf16>
    %cst = arith.constant dense<0.000000e+00> : vector<128x32xf32>
    %2 = tpu.matmul %0, %1, %cst {dimension_numbers = #tpu.dot_dimension_numbers<[1], [0], [0], [1], [0, 0, 1, 1], [], []>} : vector<128x32xbf16>, vector<32x32xbf16>, vector<128x32xf32> -> vector<128x32xf32>
    %c0_3 = arith.constant 0 : index
    %c0_4 = arith.constant 0 : index
    %3 = vector.load %arg3[%c0_3, %c0_4] : memref<1x32xf32, #tpu.memory_space<vmem>>, vector<1x32xf32>
    %4 = vector.broadcast %3 : vector<1x32xf32> to vector<128x32xf32>
    %5 = arith.addf %2, %4 : vector<128x32xf32>
    %6 = arith.negf %5 : vector<128x32xf32>
    %7 = math.exp %6 : vector<128x32xf32>
    %cst_5 = arith.constant 1.000000e+00 : f32
    %8 = vector.broadcast %cst_5 : f32 to vector<128x32xf32>
    %9 = arith.addf %8, %7 : vector<128x32xf32>
    %10 = arith.divf %8, %9 : vector<128x32xf32>
    %11 = arith.mulf %5, %10 : vector<128x32xf32>
    %12 = arith.truncf %11 : vector<128x32xf32> to vector<128x32xbf16>
    %c0_6 = arith.constant 0 : index
    %c0_7 = arith.constant 0 : index
    %13 = vector.load %arg4[%c0_6, %c0_7] : memref<128x32xbf16, #tpu.memory_space<vmem>>, vector<128x32xbf16>
    tpu.vector_store %arg4[%c0_6, %c0_7], %12 {strides = array<i32>} : memref<128x32xbf16, #tpu.memory_space<vmem>>, vector<128x32xbf16>,
    return
  }
  func.func @transform_0(%arg0: i32) -> (i32, i32) {
    %c0_i32 = arith.constant 0 : i32
    %c0_i32_0 = arith.constant 0 : i32
    return %arg0, %c0_i32 : i32, i32
  }
  func.func @transform_1(%arg0: i32) -> (i32, i32) {
    %c0_i32 = arith.constant 0 : i32
    %c0_i32_0 = arith.constant 0 : i32
    %c0_i32_1 = arith.constant 0 : i32
    return %c0_i32, %c0_i32_0 : i32, i32
  }
  func.func @transform_2(%arg0: i32) -> (i32, i32) {
    %c0_i32 = arith.constant 0 : i32
    %c0_i32_0 = arith.constant 0 : i32
    %c0_i32_1 = arith.constant 0 : i32
    return %c0_i32, %c0_i32_0 : i32, i32
  }
  func.func @transform_3(%arg0: i32) -> (i32, i32) {
    %c0_i32 = arith.constant 0 : i32
    %c0_i32_0 = arith.constant 0 : i32
    return %arg0, %c0_i32 : i32, i32
  }
}

</mosaic_0001>

<bundles_post_ra>
// kernel: tpu_custom_call.1
= control target key start
LH: loop header
LB: loop body
LE: loop exit
PB: predicated region body
PF: predicated region fallthrough
CT: control target
= control target key end

     0   :  { %vm94_vm0 = vcmask 261120   ;;  %vm392_vm1 = vcmask 257024   ;;  %s777_s1 = inlined_call_operand.vmem [shape: bf16[32,32], index: 1, kind: input, shape index: {}]   ;;  %s778_s0 = inlined_call_operand.vmem [shape: bf16[128,32], index: 0, kind: input, shape index: {}]   ;;  %s779_s2 = inlined_call_operand.vmem [shape: f32[1,32], index: 2, kind: input, shape index: {}]   ;;  %s780_s3 = inlined_call_operand.vmem [shape: bf16[128,32], index: 3, kind: output, shape index: {}]  }
   0x1   :  { %v514_v0 = vld [vmem:[%s777_s1 + $0x8] sm:$0xff]   ;;  %v515_v1 = vld [vmem:[%s777_s1] sm:$0xff]   ;;  %v520_v6 = vld [vmem:[%s778_s0 + $0x10] sm:$0xff]  }
   0x2   :  { %490 = vmatprep.subr.bf16.mxu0 %v514_v0  ;;  %510 = vmatprep.subr.bf16.mxu1 %v514_v0  ;;  %v516_v2 = vld [vmem:[%s778_s0] sm:$0xff]   ;;  %v518_v4 = vld [vmem:[%s778_s0 + $0x8] sm:$0xff]   ;;  %v521_v7 = vld [vmem:[%s778_s0 + $0x30] sm:$0xff]  }
   0x3   :  { %491 = vmatpush3.bf16.msra.mxu0 %v514_v0  ;;  %512 = vmatpush3.bf16.msra.mxu1 %v514_v0  ;;  %v517_v3 = vld [vmem:[%s778_s0 + $0x20] sm:$0xff]   ;;  %v519_v5 = vld [vmem:[%s778_s0 + $0x28] sm:$0xff]   ;;  %v522_v8 = vld [vmem:[%s778_s0 + $0x18] sm:$0xff]  }
   0x4   :  { %492 = vmatprep.subr.bf16.mxu0 %v515_v1  ;;  %511 = vmatprep.subr.bf16.mxu1 %v515_v1  ;;  %v523_v9 = vld [vmem:[%s778_s0 + $0x38] sm:$0xff]   ;;  %v413_v10 = vld [vmem:[%s779_s2] ss:$0 sm:$0xff] }
   0x5   :  { %494 = vmatprep.mubr.msk.bf16.mxu0 %vm94_vm0, %v516_v2  ;;  %502 = vmatprep.mubr.msk.bf16.mxu1 %vm94_vm0, %v517_v3 }
   0x7   :  { %493 = vmatpush3.bf16.msra.mxu0 %v515_v1  ;;  %513 = vmatpush3.bf16.msra.mxu1 %v515_v1 }
   0xa   :  { %495 = vmatmul.mubr.msk.bf16.vlgmr.msra.gmra.mxu0 %vm94_vm0, %v518_v4  ;;  %503 = vmatmul.mubr.msk.bf16.vlgmr.msra.gmra.mxu1 %vm94_vm0, %v519_v5 }
   0xb   :  { %498 = vmatprep.mubr.msk.bf16.mxu0 %vm94_vm0, %v520_v6  ;;  %506 = vmatprep.mubr.msk.bf16.mxu1 %vm94_vm0, %v521_v7 }
  0x12   :  { %499 = vmatmul.mubr.msk.bf16.gmra.mxu0 %vm94_vm0, %v522_v8  ;;  %507 = vmatmul.mubr.msk.bf16.gmra.mxu1 %vm94_vm0, %v523_v9 }
  0xca   :  { %v496_v11 = vpop.f32.mrf.mxu0  ;;  %v504_v12 = vpop.f32.mrf.mxu1 }
  0xcb   :  { %v649_v13 = vadd.f32 %v496_v11, %v413_v10  ;;  %v651_v14 = vadd.f32 %v504_v12, %v413_v10 }
  0xcc   :  { %v153_v15 = vpop.f32.mrf.mxu0  ;;  %v185_v16 = vpop.f32.mrf.mxu1 }
  0xcd   :  { %v434_v17 = vmul.f32 -1.442695, %v649_v13  ;;  %v442_v18 = vmul.f32 -1.442695, %v651_v14  ;;  %v655_v19 = vadd.f32 %v413_v10, %v153_v15  ;;  %v657_v20 = vadd.f32 %v413_v10, %v185_v16 }
  0xce   :  { %v497_v21 = vpop.f32.mrf.mxu0  ;;  %v505_v22 = vpop.f32.mrf.mxu1 }
  0xcf   :  { %524 = vpow2.f32 %v434_v17  ;;  %v432_v23 = vmul.f32 -1.442695, %v655_v19  ;;  %v440_v24 = vmul.f32 -1.442695, %v657_v20  ;;  %v661_v25 = vadd.f32 %v497_v21, %v413_v10 }
  0xd0   :  { %526 = vpow2.f32 %v442_v18  ;;  %v663_v26 = vadd.f32 %v505_v22, %v413_v10  ;;  %v156_v27 = vpop.f32.mrf.mxu0  ;;  %v188_v28 = vpop.f32.mrf.mxu1 }
  0xd1   :  { %528 = vpow2.f32 %v432_v23  ;;  %v435_v29 = vmul.f32 -1.442695, %v661_v25  ;;  %v666_v30 = vadd.f32 %v413_v10, %v156_v27  ;;  %v668_v31 = vadd.f32 %v413_v10, %v188_v28 }
  0xd2   :  { %530 = vpow2.f32 %v440_v24  ;;  %v443_v32 = vmul.f32 -1.442695, %v663_v26  ;;  %v500_v33 = vpop.f32.mrf.mxu0  ;;  %v508_v34 = vpop.f32.mrf.mxu1 }
  0xd3   :  { %532 = vpow2.f32 %v435_v29  ;;  %v433_v35 = vmul.f32 -1.442695, %v666_v30  ;;  %v441_v36 = vmul.f32 -1.442695, %v668_v31  ;;  %v673_v37 = vadd.f32 %v500_v33, %v413_v10 }
  0xd4   :  { %534 = vpow2.f32 %v443_v32  ;;  %v675_v38 = vadd.f32 %v508_v34, %v413_v10  ;;  %v169_v39 = vpop.f32.mrf.mxu0  ;;  %v201_v40 = vpop.f32.mrf.mxu1 }
  0xd5   :  { %536 = vpow2.f32 %v433_v35  ;;  %v438_v41 = vmul.f32 -1.442695, %v673_v37  ;;  %v678_v42 = vadd.f32 %v413_v10, %v169_v39  ;;  %v680_v43 = vadd.f32 %v413_v10, %v201_v40 }
  0xd6   :  { %538 = vpow2.f32 %v441_v36  ;;  %v446_v44 = vmul.f32 -1.442695, %v675_v38  ;;  %v501_v45 = vpop.f32.mrf.mxu0  ;;  %v509_v46 = vpop.f32.mrf.mxu1 }
  0xd7   :  { %540 = vpow2.f32 %v438_v41  ;;  %v436_v47 = vmul.f32 -1.442695, %v678_v42  ;;  %v444_v48 = vmul.f32 -1.442695, %v680_v43  ;;  %v685_v49 = vadd.f32 %v501_v45, %v413_v10 }
  0xd8   :  { %542 = vpow2.f32 %v446_v44  ;;  %v687_v50 = vadd.f32 %v509_v46, %v413_v10  ;;  %v172_v51 = vpop.f32.mrf.mxu0  ;;  %v204_v52 = vpop.f32.mrf.mxu1 }
  0xd9   :  { %544 = vpow2.f32 %v436_v47  ;;  %v439_v53 = vmul.f32 -1.442695, %v685_v49  ;;  %v690_v54 = vadd.f32 %v413_v10, %v172_v51  ;;  %v692_v55 = vadd.f32 %v413_v10, %v204_v52 }
  0xda   :  { %546 = vpow2.f32 %v444_v48  ;;  %v447_v56 = vmul.f32 -1.442695, %v687_v50 }
  0xdb   :  { %548 = vpow2.f32 %v439_v53  ;;  %v437_v57 = vmul.f32 -1.442695, %v690_v54  ;;  %v445_v58 = vmul.f32 -1.442695, %v692_v55 }
  0xdc   :  { %v525_v59 = vpop.eup %524  ;;  %550 = vpow2.f32 %v447_v56 }
  0xdd   :  { %v527_v60 = vpop.eup %526  ;;  %v266_v61 = vadd.f32 1.0, %v525_v59  ;;  %552 = vpow2.f32 %v437_v57 }
  0xde   :  { %v529_v62 = vpop.eup %528  ;;  %v274_v63 = vadd.f32 1.0, %v527_v60  ;;  %554 = vpow2.f32 %v445_v58 }
  0xdf   :  { %v531_v0 = vpop.eup %530  ;;  %556 = vrcp.f32 %v266_v61  ;;  %v264_v1 = vadd.f32 1.0, %v529_v62 }
  0xe0   :  { %v533_v2 = vpop.eup %532  ;;  %558 = vrcp.f32 %v274_v63  ;;  %v272_v3 = vadd.f32 1.0, %v531_v0 }
  0xe1   :  { %v535_v4 = vpop.eup %534  ;;  %560 = vrcp.f32 %v264_v1  ;;  %v267_v5 = vadd.f32 1.0, %v533_v2 }
  0xe2   :  { %v537_v6 = vpop.eup %536  ;;  %562 = vrcp.f32 %v272_v3  ;;  %v275_v7 = vadd.f32 1.0, %v535_v4 }
  0xe3   :  { %v539_v8 = vpop.eup %538  ;;  %564 = vrcp.f32 %v267_v5  ;;  %v265_v9 = vadd.f32 1.0, %v537_v6 }
  0xe4   :  { %v541_v10 = vpop.eup %540  ;;  %566 = vrcp.f32 %v275_v7  ;;  %v273_v11 = vadd.f32 1.0, %v539_v8 }
  0xe5   :  { %v543_v12 = vpop.eup %542  ;;  %568 = vrcp.f32 %v265_v9  ;;  %v270_v15 = vadd.f32 1.0, %v541_v10 }
  0xe6   :  { %v545_v16 = vpop.eup %544  ;;  %570 = vrcp.f32 %v273_v11  ;;  %v278_v17 = vadd.f32 1.0, %v543_v12 }
  0xe7   :  { %v547_v18 = vpop.eup %546  ;;  %572 = vrcp.f32 %v270_v15  ;;  %v268_v21 = vadd.f32 1.0, %v545_v16 }
  0xe8   :  { %v549_v22 = vpop.eup %548  ;;  %574 = vrcp.f32 %v278_v17  ;;  %v276_v23 = vadd.f32 1.0, %v547_v18 }
  0xe9   :  { %v551_v24 = vpop.eup %550  ;;  %576 = vrcp.f32 %v268_v21  ;;  %v271_v27 = vadd.f32 1.0, %v549_v22 }
  0xea   :  { %v553_v28 = vpop.eup %552  ;;  %578 = vrcp.f32 %v276_v23  ;;  %v279_v29 = vadd.f32 1.0, %v551_v24 }
  0xeb   :  { %v555_v32 = vpop.eup %554  ;;  %580 = vrcp.f32 %v271_v27  ;;  %v269_v33 = vadd.f32 1.0, %v553_v28 }
  0xec   :  { %v557_v34 = vpop.eup %556  ;;  %582 = vrcp.f32 %v279_v29  ;;  %v277_v35 = vadd.f32 1.0, %v555_v32 }
  0xed   :  { %v559_v36 = vpop.eup %558  ;;  %v314_v39 = vmul.f32 %v557_v34, %v649_v13  ;;  %584 = vrcp.f32 %v269_v33 }
  0xee   :  { %v561_v40 = vpop.eup %560  ;;  %v322_v41 = vmul.f32 %v559_v36, %v651_v14  ;;  %586 = vrcp.f32 %v277_v35 }
  0xef   :  { %v563_v44 = vpop.eup %562  ;;  %v466_v45 = vpack.c.bf16 %v314_v39, %v314_v39  ;;  %v312_v46 = vmul.f32 %v561_v40, %v655_v19 }
  0xf0   :  { %v565_v47 = vpop.eup %564  ;;  %v474_v48 = vpack.c.bf16 %v322_v41, %v322_v41  ;;  %v320_v51 = vmul.f32 %v563_v44, %v657_v20 }
  0xf1   :  { %v567_v52 = vpop.eup %566  ;;  %395 = vst.msk [vmem:[%s780_s3 + $0x8] sm:$0xf] %vm392_vm1, %v466_v45  ;;  %v464_v13 = vpack.c.bf16 %v312_v46, %v312_v46  ;;  %v315_v53 = vmul.f32 %v565_v47, %v661_v25 }
  0xf2   :  { %v569_v56 = vpop.eup %568  ;;  %403 = vst.msk [vmem:[%s780_s3 + $0x28] sm:$0xf] %vm392_vm1, %v474_v48  ;;  %v472_v14 = vpack.c.bf16 %v320_v51, %v320_v51  ;;  %v323_v19 = vmul.f32 %v567_v52, %v663_v26 }
  0xf3   :  { %v571_v57 = vpop.eup %570  ;;  %393 = vst.msk [vmem:[%s780_s3] sm:$0xf] %vm392_vm1, %v464_v13  ;;  %v467_v20 = vpack.c.bf16 %v315_v53, %v315_v53  ;;  %v313_v58 = vmul.f32 %v569_v56, %v666_v30 }
  0xf4   :  { %v573_v59 = vpop.eup %572  ;;  %401 = vst.msk [vmem:[%s780_s3 + $0x20] sm:$0xf] %vm392_vm1, %v472_v14  ;;  %v475_v25 = vpack.c.bf16 %v323_v19, %v323_v19  ;;  %v321_v60 = vmul.f32 %v571_v57, %v668_v31 }
  0xf5   :  { %v575_v61 = vpop.eup %574  ;;  %396 = vst.msk [vmem:[%s780_s3 + $0xc] sm:$0xf] %vm392_vm1, %v467_v20  ;;  %v465_v26 = vpack.c.bf16 %v313_v58, %v313_v58  ;;  %v318_v62 = vmul.f32 %v573_v59, %v673_v37 }
  0xf6   :  { %v577_v63 = vpop.eup %576  ;;  %404 = vst.msk [vmem:[%s780_s3 + $0x2c] sm:$0xf] %vm392_vm1, %v475_v25  ;;  %v473_v30 = vpack.c.bf16 %v321_v60, %v321_v60  ;;  %v326_v0 = vmul.f32 %v575_v61, %v675_v38 }
  0xf7   :  { %v579_v1 = vpop.eup %578  ;;  %394 = vst.msk [vmem:[%s780_s3 + $0x4] sm:$0xf] %vm392_vm1, %v465_v26  ;;  %v470_v31 = vpack.c.bf16 %v318_v62, %v318_v62  ;;  %v316_v2 = vmul.f32 %v577_v63, %v678_v42 }
  0xf8   :  { %v581_v3 = vpop.eup %580  ;;  %402 = vst.msk [vmem:[%s780_s3 + $0x24] sm:$0xf] %vm392_vm1, %v473_v30  ;;  %v478_v37 = vpack.c.bf16 %v326_v0, %v326_v0  ;;  %v324_v4 = vmul.f32 %v579_v1, %v680_v43 }
  0xf9   :  { %v583_v5 = vpop.eup %582  ;;  %399 = vst.msk [vmem:[%s780_s3 + $0x18] sm:$0xf] %vm392_vm1, %v470_v31  ;;  %v468_v38 = vpack.c.bf16 %v316_v2, %v316_v2  ;;  %v319_v6 = vmul.f32 %v581_v3, %v685_v49 }
  0xfa   :  { %v585_v7 = vpop.eup %584  ;;  %407 = vst.msk [vmem:[%s780_s3 + $0x38] sm:$0xf] %vm392_vm1, %v478_v37  ;;  %v476_v42 = vpack.c.bf16 %v324_v4, %v324_v4  ;;  %v327_v8 = vmul.f32 %v583_v5, %v687_v50 }
  0xfb   :  { %v587_v9 = vpop.eup %586  ;;  %397 = vst.msk [vmem:[%s780_s3 + $0x10] sm:$0xf] %vm392_vm1, %v468_v38  ;;  %v471_v43 = vpack.c.bf16 %v319_v6, %v319_v6  ;;  %v317_v10 = vmul.f32 %v585_v7, %v690_v54 }
  0xfc   :  { %405 = vst.msk [vmem:[%s780_s3 + $0x30] sm:$0xf] %vm392_vm1, %v476_v42  ;;  %v479_v49 = vpack.c.bf16 %v327_v8, %v327_v8  ;;  %v325_v11 = vmul.f32 %v587_v9, %v692_v55 }
  0xfd   :  { %400 = vst.msk [vmem:[%s780_s3 + $0x1c] sm:$0xf] %vm392_vm1, %v471_v43  ;;  %v469_v50 = vpack.c.bf16 %v317_v10, %v317_v10 }
  0xfe   :  { %408 = vst.msk [vmem:[%s780_s3 + $0x3c] sm:$0xf] %vm392_vm1, %v479_v49  ;;  %v477_v54 = vpack.c.bf16 %v325_v11, %v325_v11 }
  0xff   :  { %398 = vst.msk [vmem:[%s780_s3 + $0x14] sm:$0xf] %vm392_vm1, %v469_v50 }
 0x100   :  { %406 = vst.msk [vmem:[%s780_s3 + $0x34] sm:$0xf] %vm392_vm1, %v477_v54 }

</bundles_post_ra>
